<compile_context>
chip_gen: v6e
topology: v6e:2x2x1
jax: 0.10.0
libtpu: 0.0.40
codegen_flags: <defaults>
</compile_context>

<pallas_src>
import math

import jax
import jax.numpy as jnp
from jax.experimental import pallas as pl
from jax.experimental.pallas import tpu as pltpu

_SQRT_HALF = 0.7071067811865476


def _erf_approx(x):
    # Abramowitz & Stegun 7.1.26, max abs error 1.5e-7 (fp32-noise level).
    # The divide is done as EUP vrcp (approx) + one Newton-Raphson step so the
    # expensive part sits in the (otherwise idle) transcendental slot while
    # keeping full f32 accuracy.
    p = 0.3275911
    a1, a2, a3, a4, a5 = (0.254829592, -0.284496736, 1.421413741,
                          -1.453152027, 1.061405429)
    ax = jnp.abs(x)
    d = 1.0 + p * ax
    r = pl.reciprocal(d, approx=True)      # EUP slot, ~2^-14 rel err
    t = r * (2.0 - d * r)                  # 1 NR step -> ~full f32 precision
    poly = ((((a5 * t + a4) * t + a3) * t + a2) * t + a1) * t
    e = 1.0 - poly * jnp.exp(-ax * ax)     # exp also on the EUP slot
    return jnp.where(x < 0.0, -e, e)


def _gelu_exact(x):
    # Matches torch.nn.GELU() default (approximate='none').
    return 0.5 * x * (1.0 + _erf_approx(x * _SQRT_HALF))


def _ebm_prior_kernel(z_ref, w1_ref, b1_ref, w2_ref, b2_ref, w3_ref, b3_ref,
                      o_ref):
    # z_ref : (TB, Din)        one batch tile (batch folded into matmul M)
    # w*    : (K, N) weights   b* : (1, N) biases (plain broadcast add)
    # o_ref : (TB, Dout)
    z = z_ref[...]
    h = jnp.dot(z, w1_ref[...], preferred_element_type=jnp.float32)
    h = _gelu_exact(h + b1_ref[...])
    h = jnp.dot(h, w2_ref[...], preferred_element_type=jnp.float32)
    h = _gelu_exact(h + b2_ref[...])
    out = jnp.dot(h, w3_ref[...], preferred_element_type=jnp.float32)
    out = out + b3_ref[...]
    o_ref[...] = out.astype(o_ref.dtype)


def ebm_prior_pallas(z, w1, b1, w2, b2, w3, b3):
    """EBM_Prior.forward.

    z  : (B, latent_dim, 1, 1) or (B, latent_dim)
    w1 : (latent_dim, mid)   b1 : (mid,)
    w2 : (mid, mid)          b2 : (mid,)
    w3 : (mid, out_dim)      b3 : (out_dim,)
    returns (B, out_dim, 1, 1)
    """
    Din, M = w1.shape
    Dout = w3.shape[1]
    B = z.shape[0]

    # z.squeeze() in the PyTorch forward just drops the trailing 1x1 dims.
    x = z.reshape(B, Din)

    # Batch tile selection (review):
    #  * B <= 512: one grid step covering the whole batch -- three tiny
    #    matmuls are far below the ~600-cycle per-step overhead, so splitting
    #    only adds cost (including on v7x: sub-microsecond tiles per core
    #    cannot hide megacore startup cost).
    #  * B  > 512: TB = 256 rows per step; fills the MXU M dim on v6e/v7x
    #    (v5e saturates at 128, the rest is overhead amortization) and the
    #    parallel grid lets v7x's two TensorCores split the batch.
    # No wrapper pad: Pallas masks the partial last block; padded rows are
    # row-independent garbage that never reaches the real output rows.
    TB = B if B <= 512 else 256
    grid = (pl.cdiv(B, TB),)

    out = pl.pallas_call(
        _ebm_prior_kernel,
        out_shape=jax.ShapeDtypeStruct((B, Dout), x.dtype),
        grid=grid,
        in_specs=[
            pl.BlockSpec((TB, Din), lambda i: (i, 0)),
            pl.BlockSpec((Din, M), lambda i: (0, 0)),   # weights: resident
            pl.BlockSpec((1, M), lambda i: (0, 0)),
            pl.BlockSpec((M, M), lambda i: (0, 0)),
            pl.BlockSpec((1, M), lambda i: (0, 0)),
            pl.BlockSpec((M, Dout), lambda i: (0, 0)),
            pl.BlockSpec((1, Dout), lambda i: (0, 0)),
        ],
        out_specs=pl.BlockSpec((TB, Dout), lambda i: (i, 0)),
        compiler_params=pltpu.CompilerParams(
            dimension_semantics=("parallel",)),
    )(x, w1, b1.reshape(1, -1), w2, b2.reshape(1, -1), w3, b3.reshape(1, -1))

    # The final `.view(-1, out_dim, 1, 1)` is a free wrapper reshape.
    return out.reshape(B, Dout, 1, 1)


def ebm_prior_reference(z, w1, b1, w2, b2, w3, b3):
    """Pure-JAX reference matching the PyTorch forward (exact erf GELU)."""
    B = z.shape[0]
    x = z.reshape(B, -1)
    h = jax.nn.gelu(x @ w1 + b1, approximate=False)
    h = jax.nn.gelu(h @ w2 + b2, approximate=False)
    out = h @ w3 + b3
    return out.reshape(B, w3.shape[1], 1, 1)


if __name__ == "__main__":
    # Small config consistent with the module: EBM_Prior(ebm_out_dim,
    # ebm_middle_dim, latent_dim) applied to a (B, latent, 1, 1) latent.
    latent_dim, ebm_middle_dim, ebm_out_dim = 32, 64, 16
    B = 16

    key = jax.random.PRNGKey(0)
    kz, k1w, k1b, k2w, k2b, k3w, k3b = jax.random.split(key, 7)

    def linear_init(kw, kb, fan_in, fan_out):
        # Mirrors the scale of PyTorch's default nn.Linear init.
        bound = 1.0 / math.sqrt(fan_in)
        w = jax.random.uniform(kw, (fan_in, fan_out), jnp.float32, -bound, bound)
        b = jax.random.uniform(kb, (fan_out,), jnp.float32, -bound, bound)
        return w, b

    z = jax.random.normal(kz, (B, latent_dim, 1, 1), dtype=jnp.float32)
    w1, b1 = linear_init(k1w, k1b, latent_dim, ebm_middle_dim)
    w2, b2 = linear_init(k2w, k2b, ebm_middle_dim, ebm_middle_dim)
    w3, b3 = linear_init(k3w, k3b, ebm_middle_dim, ebm_out_dim)

    out = ebm_prior_pallas(z, w1, b1, w2, b2, w3, b3)
    out = jax.block_until_ready(out)

    ref = ebm_prior_reference(z, w1, b1, w2, b2, w3, b3)
    ref = jax.block_until_ready(ref)

    assert out.shape == (B, ebm_out_dim, 1, 1), out.shape
    if not jnp.allclose(out, ref, atol=1e-4, rtol=1e-4):
        raise AssertionError("Pallas EBM_Prior output does not match reference")

    print("KERNEL_OK")
</pallas_src>

<mosaic_0001>
module attributes {stable_mosaic.version = 11 : i64} {
  func.func @_ebm_prior_kernel(%arg0: i32, %arg1: memref<16x32xf32, #tpu.memory_space<vmem>>, %arg2: memref<32x64xf32, #tpu.memory_space<vmem>>, %arg3: memref<1x64xf32, #tpu.memory_space<vmem>>, %arg4: memref<64x64xf32, #tpu.memory_space<vmem>>, %arg5: memref<1x64xf32, #tpu.memory_space<vmem>>, %arg6: memref<64x16xf32, #tpu.memory_space<vmem>>, %arg7: memref<1x16xf32, #tpu.memory_space<vmem>>, %arg8: memref<16x16xf32, #tpu.memory_space<vmem>>) attributes {dimension_semantics = [#tpu.dimension_semantics<parallel>], iteration_bounds = array<i64: 1>, scalar_prefetch = 0 : i64, scratch_operands = 0 : i64, tpu.core_type = #tpu.core_type<tc>, window_params = [{transform_indices = @transform_0, window_bounds = array<i64: 16, 32>}, {pipeline_mode = #tpu.pipeline_mode<synchronous>, transform_indices = @transform_1, window_bounds = array<i64: 32, 64>}, {pipeline_mode = #tpu.pipeline_mode<synchronous>, transform_indices = @transform_2, window_bounds = array<i64: 1, 64>}, {pipeline_mode = #tpu.pipeline_mode<synchronous>, transform_indices = @transform_3, window_bounds = array<i64: 64, 64>}, {pipeline_mode = #tpu.pipeline_mode<synchronous>, transform_indices = @transform_4, window_bounds = array<i64: 1, 64>}, {pipeline_mode = #tpu.pipeline_mode<synchronous>, transform_indices = @transform_5, window_bounds = array<i64: 64, 16>}, {pipeline_mode = #tpu.pipeline_mode<synchronous>, transform_indices = @transform_6, window_bounds = array<i64: 1, 16>}, {transform_indices = @transform_7, window_bounds = array<i64: 16, 16>}]} {
    %c0 = arith.constant 0 : index
    %c0_0 = arith.constant 0 : index
    %0 = vector.load %arg1[%c0, %c0_0] : memref<16x32xf32, #tpu.memory_space<vmem>>, vector<16x32xf32>
    %c0_1 = arith.constant 0 : index
    %c0_2 = arith.constant 0 : index
    %1 = vector.load %arg2[%c0_1, %c0_2] : memref<32x64xf32, #tpu.memory_space<vmem>>, vector<32x64xf32>
    %cst = arith.constant dense<0.000000e+00> : vector<16x64xf32>
    %2 = tpu.matmul %0, %1, %cst {dimension_numbers = #tpu.dot_dimension_numbers<[1], [0], [0], [1], [0, 0, 1, 1], [], []>} : vector<16x32xf32>, vector<32x64xf32>, vector<16x64xf32> -> vector<16x64xf32>
    %c0_3 = arith.constant 0 : index
    %c0_4 = arith.constant 0 : index
    %3 = vector.load %arg3[%c0_3, %c0_4] : memref<1x64xf32, #tpu.memory_space<vmem>>, vector<1x64xf32>
    %4 = vector.broadcast %3 : vector<1x64xf32> to vector<16x64xf32>
    %5 = arith.addf %2, %4 : vector<16x64xf32>
    %cst_5 = arith.constant 5.000000e-01 : f32
    %6 = vector.broadcast %cst_5 : f32 to vector<16x64xf32>
    %7 = arith.mulf %6, %5 : vector<16x64xf32>
    %cst_6 = arith.constant 0.707106769 : f32
    %8 = vector.broadcast %cst_6 : f32 to vector<16x64xf32>
    %9 = arith.mulf %5, %8 : vector<16x64xf32>
    %10 = math.absf %9 : vector<16x64xf32>
    %cst_7 = arith.constant 0.327591091 : f32
    %11 = vector.broadcast %cst_7 : f32 to vector<16x64xf32>
    %12 = arith.mulf %11, %10 : vector<16x64xf32>
    %cst_8 = arith.constant 1.000000e+00 : f32
    %13 = vector.broadcast %cst_8 : f32 to vector<16x64xf32>
    %14 = arith.addf %13, %12 : vector<16x64xf32>
    %15 = tpu.reciprocal %14 {approx = true} : vector<16x64xf32> -> vector<16x64xf32>
    %16 = arith.mulf %14, %15 : vector<16x64xf32>
    %cst_9 = arith.constant 2.000000e+00 : f32
    %17 = vector.broadcast %cst_9 : f32 to vector<16x64xf32>
    %18 = arith.subf %17, %16 : vector<16x64xf32>
    %19 = arith.mulf %15, %18 : vector<16x64xf32>
    %cst_10 = arith.constant 1.06140542 : f32
    %20 = vector.broadcast %cst_10 : f32 to vector<16x64xf32>
    %21 = arith.mulf %20, %19 : vector<16x64xf32>
    %cst_11 = arith.constant -1.45315206 : f32
    %22 = vector.broadcast %cst_11 : f32 to vector<16x64xf32>
    %23 = arith.addf %21, %22 : vector<16x64xf32>
    %24 = arith.mulf %23, %19 : vector<16x64xf32>
    %cst_12 = arith.constant 1.42141378 : f32
    %25 = vector.broadcast %cst_12 : f32 to vector<16x64xf32>
    %26 = arith.addf %24, %25 : vector<16x64xf32>
    %27 = arith.mulf %26, %19 : vector<16x64xf32>
    %cst_13 = arith.constant -0.284496725 : f32
    %28 = vector.broadcast %cst_13 : f32 to vector<16x64xf32>
    %29 = arith.addf %27, %28 : vector<16x64xf32>
    %30 = arith.mulf %29, %19 : vector<16x64xf32>
    %cst_14 = arith.constant 0.254829586 : f32
    %31 = vector.broadcast %cst_14 : f32 to vector<16x64xf32>
    %32 = arith.addf %30, %31 : vector<16x64xf32>
    %33 = arith.mulf %32, %19 : vector<16x64xf32>
    %cst_15 = arith.constant 0.000000e+00 : f32
    %34 = vector.broadcast %cst_15 : f32 to vector<16x64xf32>
    %35 = arith.subf %34, %10 : vector<16x64xf32>
    %36 = arith.mulf %35, %10 : vector<16x64xf32>
    %37 = math.exp %36 : vector<16x64xf32>
    %38 = arith.mulf %33, %37 : vector<16x64xf32>
    %cst_16 = arith.constant 1.000000e+00 : f32
    %39 = vector.broadcast %cst_16 : f32 to vector<16x64xf32>
    %40 = arith.subf %39, %38 : vector<16x64xf32>
    %cst_17 = arith.constant 0.000000e+00 : f32
    %41 = vector.broadcast %cst_17 : f32 to vector<16x64xf32>
    %42 = arith.cmpf olt, %9, %41 : vector<16x64xf32>
    %cst_18 = arith.constant 0.000000e+00 : f32
    %43 = vector.broadcast %cst_18 : f32 to vector<16x64xf32>
    %44 = arith.subf %43, %40 : vector<16x64xf32>
    %45 = arith.select %42, %44, %40 : vector<16x64xi1>, vector<16x64xf32>
    %cst_19 = arith.constant 1.000000e+00 : f32
    %46 = vector.broadcast %cst_19 : f32 to vector<16x64xf32>
    %47 = arith.addf %46, %45 : vector<16x64xf32>
    %48 = arith.mulf %7, %47 : vector<16x64xf32>
    %c0_20 = arith.constant 0 : index
    %c0_21 = arith.constant 0 : index
    %49 = vector.load %arg4[%c0_20, %c0_21] : memref<64x64xf32, #tpu.memory_space<vmem>>, vector<64x64xf32>
    %cst_22 = arith.constant dense<0.000000e+00> : vector<16x64xf32>
    %50 = tpu.matmul %48, %49, %cst_22 {dimension_numbers = #tpu.dot_dimension_numbers<[1], [0], [0], [1], [0, 0, 1, 1], [], []>} : vector<16x64xf32>, vector<64x64xf32>, vector<16x64xf32> -> vector<16x64xf32>
    %c0_23 = arith.constant 0 : index
    %c0_24 = arith.constant 0 : index
    %51 = vector.load %arg5[%c0_23, %c0_24] : memref<1x64xf32, #tpu.memory_space<vmem>>, vector<1x64xf32>
    %52 = vector.broadcast %51 : vector<1x64xf32> to vector<16x64xf32>
    %53 = arith.addf %50, %52 : vector<16x64xf32>
    %cst_25 = arith.constant 5.000000e-01 : f32
    %54 = vector.broadcast %cst_25 : f32 to vector<16x64xf32>
    %55 = arith.mulf %54, %53 : vector<16x64xf32>
    %cst_26 = arith.constant 0.707106769 : f32
    %56 = vector.broadcast %cst_26 : f32 to vector<16x64xf32>
    %57 = arith.mulf %53, %56 : vector<16x64xf32>
    %58 = math.absf %57 : vector<16x64xf32>
    %cst_27 = arith.constant 0.327591091 : f32
    %59 = vector.broadcast %cst_27 : f32 to vector<16x64xf32>
    %60 = arith.mulf %59, %58 : vector<16x64xf32>
    %cst_28 = arith.constant 1.000000e+00 : f32
    %61 = vector.broadcast %cst_28 : f32 to vector<16x64xf32>
    %62 = arith.addf %61, %60 : vector<16x64xf32>
    %63 = tpu.reciprocal %62 {approx = true} : vector<16x64xf32> -> vector<16x64xf32>
    %64 = arith.mulf %62, %63 : vector<16x64xf32>
    %cst_29 = arith.constant 2.000000e+00 : f32
    %65 = vector.broadcast %cst_29 : f32 to vector<16x64xf32>
    %66 = arith.subf %65, %64 : vector<16x64xf32>
    %67 = arith.mulf %63, %66 : vector<16x64xf32>
    %cst_30 = arith.constant 1.06140542 : f32
    %68 = vector.broadcast %cst_30 : f32 to vector<16x64xf32>
    %69 = arith.mulf %68, %67 : vector<16x64xf32>
    %cst_31 = arith.constant -1.45315206 : f32
    %70 = vector.broadcast %cst_31 : f32 to vector<16x64xf32>
    %71 = arith.addf %69, %70 : vector<16x64xf32>
    %72 = arith.mulf %71, %67 : vector<16x64xf32>
    %cst_32 = arith.constant 1.42141378 : f32
    %73 = vector.broadcast %cst_32 : f32 to vector<16x64xf32>
    %74 = arith.addf %72, %73 : vector<16x64xf32>
    %75 = arith.mulf %74, %67 : vector<16x64xf32>
    %cst_33 = arith.constant -0.284496725 : f32
    %76 = vector.broadcast %cst_33 : f32 to vector<16x64xf32>
    %77 = arith.addf %75, %76 : vector<16x64xf32>
    %78 = arith.mulf %77, %67 : vector<16x64xf32>
    %cst_34 = arith.constant 0.254829586 : f32
    %79 = vector.broadcast %cst_34 : f32 to vector<16x64xf32>
    %80 = arith.addf %78, %79 : vector<16x64xf32>
    %81 = arith.mulf %80, %67 : vector<16x64xf32>
    %cst_35 = arith.constant 0.000000e+00 : f32
    %82 = vector.broadcast %cst_35 : f32 to vector<16x64xf32>
    %83 = arith.subf %82, %58 : vector<16x64xf32>
    %84 = arith.mulf %83, %58 : vector<16x64xf32>
    %85 = math.exp %84 : vector<16x64xf32>
    %86 = arith.mulf %81, %85 : vector<16x64xf32>
    %cst_36 = arith.constant 1.000000e+00 : f32
    %87 = vector.broadcast %cst_36 : f32 to vector<16x64xf32>
    %88 = arith.subf %87, %86 : vector<16x64xf32>
    %cst_37 = arith.constant 0.000000e+00 : f32
    %89 = vector.broadcast %cst_37 : f32 to vector<16x64xf32>
    %90 = arith.cmpf olt, %57, %89 : vector<16x64xf32>
    %cst_38 = arith.constant 0.000000e+00 : f32
    %91 = vector.broadcast %cst_38 : f32 to vector<16x64xf32>
    %92 = arith.subf %91, %88 : vector<16x64xf32>
    %93 = arith.select %90, %92, %88 : vector<16x64xi1>, vector<16x64xf32>
    %cst_39 = arith.constant 1.000000e+00 : f32
    %94 = vector.broadcast %cst_39 : f32 to vector<16x64xf32>
    %95 = arith.addf %94, %93 : vector<16x64xf32>
    %96 = arith.mulf %55, %95 : vector<16x64xf32>
    %c0_40 = arith.constant 0 : index
    %c0_41 = arith.constant 0 : index
    %97 = vector.load %arg6[%c0_40, %c0_41] : memref<64x16xf32, #tpu.memory_space<vmem>>, vector<64x16xf32>
    %cst_42 = arith.constant dense<0.000000e+00> : vector<16x16xf32>
    %98 = tpu.matmul %96, %97, %cst_42 {dimension_numbers = #tpu.dot_dimension_numbers<[1], [0], [0], [1], [0, 0, 1, 1], [], []>} : vector<16x64xf32>, vector<64x16xf32>, vector<16x16xf32> -> vector<16x16xf32>
    %c0_43 = arith.constant 0 : index
    %c0_44 = arith.constant 0 : index
    %99 = vector.load %arg7[%c0_43, %c0_44] : memref<1x16xf32, #tpu.memory_space<vmem>>, vector<1x16xf32>
    %100 = vector.broadcast %99 : vector<1x16xf32> to vector<16x16xf32>
    %101 = arith.addf %98, %100 : vector<16x16xf32>
    %c0_45 = arith.constant 0 : index
    %c0_46 = arith.constant 0 : index
    %102 = vector.load %arg8[%c0_45, %c0_46] : memref<16x16xf32, #tpu.memory_space<vmem>>, vector<16x16xf32>
    tpu.vector_store %arg8[%c0_45, %c0_46], %101 {strides = array<i32>} : memref<16x16xf32, #tpu.memory_space<vmem>>, vector<16x16xf32>,
    return
  }
  func.func @transform_0(%arg0: i32) -> (i32, i32) {
    %c0_i32 = arith.constant 0 : i32
    %c0_i32_0 = arith.constant 0 : i32
    return %arg0, %c0_i32 : i32, i32
  }
  func.func @transform_1(%arg0: i32) -> (i32, i32) {
    %c0_i32 = arith.constant 0 : i32
    %c0_i32_0 = arith.constant 0 : i32
    %c0_i32_1 = arith.constant 0 : i32
    return %c0_i32, %c0_i32_0 : i32, i32
  }
  func.func @transform_2(%arg0: i32) -> (i32, i32) {
    %c0_i32 = arith.constant 0 : i32
    %c0_i32_0 = arith.constant 0 : i32
    %c0_i32_1 = arith.constant 0 : i32
    return %c0_i32, %c0_i32_0 : i32, i32
  }
  func.func @transform_3(%arg0: i32) -> (i32, i32) {
    %c0_i32 = arith.constant 0 : i32
    %c0_i32_0 = arith.constant 0 : i32
    %c0_i32_1 = arith.constant 0 : i32
    return %c0_i32, %c0_i32_0 : i32, i32
  }
  func.func @transform_4(%arg0: i32) -> (i32, i32) {
    %c0_i32 = arith.constant 0 : i32
    %c0_i32_0 = arith.constant 0 : i32
    %c0_i32_1 = arith.constant 0 : i32
    return %c0_i32, %c0_i32_0 : i32, i32
  }
  func.func @transform_5(%arg0: i32) -> (i32, i32) {
    %c0_i32 = arith.constant 0 : i32
    %c0_i32_0 = arith.constant 0 : i32
    %c0_i32_1 = arith.constant 0 : i32
    return %c0_i32, %c0_i32_0 : i32, i32
  }
  func.func @transform_6(%arg0: i32) -> (i32, i32) {
    %c0_i32 = arith.constant 0 : i32
    %c0_i32_0 = arith.constant 0 : i32
    %c0_i32_1 = arith.constant 0 : i32
    return %c0_i32, %c0_i32_0 : i32, i32
  }
  func.func @transform_7(%arg0: i32) -> (i32, i32) {
    %c0_i32 = arith.constant 0 : i32
    %c0_i32_0 = arith.constant 0 : i32
    return %arg0, %c0_i32 : i32, i32
  }
}

</mosaic_0001>

<bundles_post_ra>
// kernel: tpu_custom_call.1
= control target key start
LH: loop header
LB: loop body
LE: loop exit
PB: predicated region body
PF: predicated region fallthrough
CT: control target
= control target key end

     0   :  { %12 = vsyncpa [#allocation3], 0  ;;  %s738_s0 = inlined_call_operand.vmem [shape: f32[16,32], index: 0, kind: input, shape index: {}]   ;;  %s739_s1 = inlined_call_operand.hbm [shape: f32[32,64], index: 1, kind: input, shape index: {}]   ;;  %s740_s2 = inlined_call_operand.vmem [shape: f32[1,64], index: 2, kind: input, shape index: {}]   ;;  %s741_s3 = inlined_call_operand.vmem [shape: f32[64,64], index: 3, kind: input, shape index: {}]   ;;  %s742_s4 = inlined_call_operand.vmem [shape: f32[1,64], index: 4, kind: input, shape index: {}]   ;;  %s743_s5 = inlined_call_operand.vmem [shape: f32[64,16], index: 5, kind: input, shape index: {}]   ;;  %s744_s6 = inlined_call_operand.vmem [shape: f32[1,16], index: 6, kind: input, shape index: {}]   ;;  %s745_s7 = inlined_call_operand.hbm [shape: f32[16,16], index: 7, kind: output, shape index: {}]  }
   0x1   :  { %13 = vsyncpa [#allocation4], 0  ;;  %s613_s24 = smov [#allocation2]  }
   0x2   :  { %s21_s25 = sshll.u32 %s613_s24, 4  ;;  %s22_s25 = int_to_ptr.vmem [resolvable:$true] %s21_s25 }
   0x3   :  { %s577_s26 = scalar_lea.vmem %s22_s25, 512  ;;  %p582_p1 = scmp.lt.s32.totalorder %s22_s25, %s22_s25 }
   0x4   :  { %p578_p0 = scmp.ne.s32.totalorder %s22_s25, %s577_s26  ;;  %p583_p2 = scmp.lt.s32.totalorder %s577_s26, %s577_s26 }
   0x6   :  { %p584_p3 = por %p583_p2, %p582_p1 }
   0x8   :  { %p585_p4 = pnand %p584_p3, %p578_p0 }
   0xa   :  { %588 = shalt.err (!%p585_p4)
}
   0xb   :  { %s614_s27 = smov 128   ;;  %s615_s28 = smov 8  }
   0xc   :  { %27 = dma.hbm_to_vmem [thread:$0]  %s739_s1, 512, %s22_s25, [#allocation3], %s614_s27, %s614_s27, %s615_s28  }
   0xd   :  { %609 = dma.done.wait [#allocation3], 512  }
   0xe   :  { %610 = vsyncadd [#allocation3], 4294966784  ;;  %vm54_vm0 = vcmask 261120   ;;  %v46_v0 = vld [vmem:[#allocation2 + $0x18] sm:$0xff]  ;;  %v45_v1 = vld [vmem:[#allocation2 + $0x10] sm:$0xff]  ;;  %vm209_vm3 = vcmask 523264  }
   0xf   :  { %500 = vmatprep.subr.mxu0 %v46_v0  ;;  %v41_v2 = vld [vmem:[%s738_s0] sm:$0xff]  ;;  %v44_v3 = vld [vmem:[#allocation2 + $0x8] sm:$0xff]  ;;  %v201_v6 = vld [vmem:[%s741_s3 + $0x38] sm:$0xff]  ;;  %vm445_vm6 = vcmask 130048   ;;  %s616_s21 = smov [#allocation5]  }
  0x10   :  { %501 = vmatpush3.msra.mxu0 %v46_v0  ;;  %508 = vmatprep.mubr.msk.f32.mxu0 %vm54_vm0, %v41_v2  ;;  %v43_v4 = vld [vmem:[#allocation2] sm:$0xff]  ;;  %v42_v5 = vld [vmem:[%s738_s0 + $0x8] sm:$0xff]  ;;  %v200_v7 = vld [vmem:[%s741_s3 + $0x30] sm:$0xff]  ;;  %s453_s22 = sshll.u32 %s616_s21, 4  ;;  %s454_s22 = int_to_ptr.vmem [resolvable:$true] %s453_s22 }
  0x11   :  { %502 = vmatprep.subr.mxu0 %v45_v1  ;;  %511 = vmatprep.subr.mxu1 %v201_v6  ;;  %v199_v8 = vld [vmem:[%s741_s3 + $0x28] sm:$0xff]  ;;  %v198_v9 = vld [vmem:[%s741_s3 + $0x20] sm:$0xff]  ;;  %v197_v10 = vld [vmem:[%s741_s3 + $0x18] sm:$0xff]  ;;  %s589_s23 = scalar_lea.vmem %s454_s22, 256  ;;  %p594_p6 = scmp.lt.s32.totalorder %s454_s22, %s454_s22 }
  0x12   :  { %503 = vmatpush3.msra.mxu0 %v45_v1  ;;  %512 = vmatpush3.msra.mxu1 %v201_v6  ;;  %v196_v11 = vld [vmem:[%s741_s3 + $0x10] sm:$0xff]  ;;  %v195_v12 = vld [vmem:[%s741_s3 + $0x8] sm:$0xff]  ;;  %v194_v13 = vld [vmem:[%s741_s3] sm:$0xff]  ;;  %p590_p5 = scmp.ne.s32.totalorder %s454_s22, %s589_s23  ;;  %p595_p7 = scmp.lt.s32.totalorder %s589_s23, %s589_s23 }
  0x13   :  { %504 = vmatprep.subr.mxu0 %v44_v3  ;;  %513 = vmatprep.subr.mxu1 %v200_v7  ;;  %v465_v14 = vld [vmem:[%s740_s2] ss:$0 sm:$0xff] }
  0x14   :  { %505 = vmatpush3.msra.mxu0 %v44_v3  ;;  %514 = vmatpush3.msra.mxu1 %v200_v7  ;;  %p596_p8 = por %p595_p7, %p594_p6 }
  0x15   :  { %506 = vmatprep.subr.mxu0 %v43_v4  ;;  %515 = vmatprep.subr.mxu1 %v199_v8 }
  0x16   :  { %507 = vmatpush3.msra.mxu0 %v43_v4  ;;  %516 = vmatpush3.msra.mxu1 %v199_v8  ;;  %p597_p9 = pnand %p596_p8, %p590_p5 }
  0x17   :  { %509 = vmatmul.mubr.msk.f32.vlgmr.msra.gmra.mxu0 %vm54_vm0, %v42_v5  ;;  %517 = vmatprep.subr.mxu1 %v198_v9 }
  0x18   :  { %518 = vmatpush3.msra.mxu1 %v198_v9 }
  0x19   :  { %519 = vmatprep.subr.mxu1 %v197_v10 }
  0x1a   :  { %520 = vmatpush3.msra.mxu1 %v197_v10 }
  0x1b   :  { %521 = vmatprep.subr.mxu1 %v196_v11 }
  0x1c   :  { %522 = vmatpush3.msra.mxu1 %v196_v11  ;;  %v356_v11 = vld [vmem:[%s743_s5 + $0x38] sm:$0xff] }
  0x1d   :  { %523 = vmatprep.subr.mxu1 %v195_v12  ;;  %530 = vmatprep.subr.mxu0 %v356_v11 }
  0x1e   :  { %524 = vmatpush3.msra.mxu1 %v195_v12  ;;  %531 = vmatpush3.msra.mxu0 %v356_v11  ;;  %v355_v12 = vld [vmem:[%s743_s5 + $0x30] sm:$0xff] }
  0x1f   :  { %525 = vmatprep.subr.mxu1 %v194_v13  ;;  %532 = vmatprep.subr.mxu0 %v355_v12 }
  0x20   :  { %526 = vmatpush3.msra.mxu1 %v194_v13  ;;  %533 = vmatpush3.msra.mxu0 %v355_v12  ;;  %v354_v13 = vld [vmem:[%s743_s5 + $0x28] sm:$0xff] }
  0x21   :  { %534 = vmatprep.subr.mxu0 %v354_v13 }
  0x22   :  { %535 = vmatpush3.msra.mxu0 %v354_v13 }
  0xd7   :  { %v510_v15 = vpop.f32.mrf.mxu0 }
  0xd8   :  { %v133_v16 = vadd.f32 %v510_v15, %v465_v14  ;;  %v352_v15 = vld [vmem:[%s743_s5 + $0x18] sm:$0xff] }
  0xd9   :  { %v127_v17 = vpop.f32.mrf.mxu0 }
  0xda   :  { %v139_v18 = vmul.f32 0.70710677, %v133_v16  ;;  %v128_v19 = vadd.f32 %v465_v14, %v127_v17  ;;  %v137_v8 = vmul.f32 0.5, %v133_v16  ;;  %v353_v14 = vld [vmem:[%s743_s5 + $0x20] sm:$0xff]  ;;  %v351_v16 = vld [vmem:[%s743_s5 + $0x10] sm:$0xff]  ;;  %v350_v17 = vld [vmem:[%s743_s5 + $0x8] sm:$0xff] }
  0xdb   :  { %536 = vmatprep.subr.mxu0 %v353_v14 }
  0xdc   :  { %v141_v20 = vand.u32 2147483647, %v139_v18  ;;  %v138_v21 = vmul.f32 0.70710677, %v128_v19  ;;  %vm185_vm1 = vcmp.lt.f32.partialorder %v139_v18, 0.0  ;;  %v136_v6 = vmul.f32 0.5, %v128_v19  ;;  %537 = vmatpush3.msra.mxu0 %v353_v14 }
  0xdd   :  { %538 = vmatprep.subr.mxu0 %v352_v15  ;;  %v349_v18 = vld [vmem:[%s743_s5] sm:$0xff] }
  0xde   :  { %v143_v22 = vmul.f32 0.3275911, %v141_v20  ;;  %v140_v23 = vand.u32 2147483647, %v138_v21  ;;  %v173_v27 = vsub.f32 0.0, %v141_v20  ;;  %vm184_vm2 = vcmp.lt.f32.partialorder %v138_v21, 0.0  ;;  %539 = vmatpush3.msra.mxu0 %v352_v15 }
  0xdf   :  { %540 = vmatprep.subr.mxu0 %v351_v16  ;;  %v468_v19 = vld [vmem:[%s742_s4] ss:$0 sm:$0xff] }
  0xe0   :  { %v145_v24 = vadd.f32 1.0, %v143_v22  ;;  %v142_v25 = vmul.f32 0.3275911, %v140_v23  ;;  %v172_v30 = vsub.f32 0.0, %v140_v23  ;;  %v175_v33 = vmul.f32 %v173_v27, %v141_v20  ;;  %541 = vmatpush3.msra.mxu0 %v351_v16  ;;  %v471_v16 = vld [vmem:[%s744_s6] ss:$0 sm:$0xff] }
  0xe1   :  { %542 = vmatprep.subr.mxu0 %v350_v17 }
  0xe2   :  { %553 = vrcp.f32 %v145_v24  ;;  %v144_v26 = vadd.f32 1.0, %v142_v25  ;;  %v174_v37 = vmul.f32 %v172_v30, %v140_v23  ;;  %v178_v39 = vmul.f32 1.442695, %v175_v33  ;;  %543 = vmatpush3.msra.mxu0 %v350_v17 }
  0xe3   :  { %544 = vmatprep.subr.mxu0 %v349_v18 }
  0xe4   :  { %555 = vrcp.f32 %v144_v26  ;;  %v176_v42 = vmul.f32 1.442695, %v174_v37  ;;  %545 = vmatpush3.msra.mxu0 %v349_v18 }
  0xe5   :  { %557 = vpow2.f32 %v178_v39 }
  0xe6   :  { %559 = vpow2.f32 %v176_v42 }
  0xef   :  { %v554_v28 = vpop.eup %553 }
  0xf0   :  { %v149_v29 = vmul.f32 %v554_v28, %v145_v24 }
  0xf1   :  { %v556_v31 = vpop.eup %555 }
  0xf2   :  { %v151_v32 = vsub.f32 2.0, %v149_v29  ;;  %v148_v34 = vmul.f32 %v556_v31, %v144_v26  ;;  %v558_v57 = vpop.eup %557 }
  0xf3   :  { %v560_v61 = vpop.eup %559 }
  0xf4   :  { %v153_v35 = vmul.f32 %v554_v28, %v151_v32  ;;  %v150_v36 = vsub.f32 2.0, %v148_v34 }
  0xf6   :  { %v155_v38 = vmul.f32 1.0614054, %v153_v35  ;;  %v152_v40 = vmul.f32 %v556_v31, %v150_v36 }
  0xf8   :  { %v157_v41 = vadd.f32 -1.4531521, %v155_v38  ;;  %v154_v43 = vmul.f32 1.0614054, %v152_v40 }
  0xfa   :  { %v159_v44 = vmul.f32 %v157_v41, %v153_v35  ;;  %v156_v45 = vadd.f32 -1.4531521, %v154_v43 }
  0xfc   :  { %v161_v46 = vadd.f32 1.4214138, %v159_v44  ;;  %v158_v47 = vmul.f32 %v156_v45, %v152_v40 }
  0xfe   :  { %v163_v48 = vmul.f32 %v161_v46, %v153_v35  ;;  %v160_v49 = vadd.f32 1.4214138, %v158_v47 }
 0x100   :  { %v165_v50 = vadd.f32 -0.28449672, %v163_v48  ;;  %v162_v51 = vmul.f32 %v160_v49, %v152_v40 }
 0x102   :  { %v167_v52 = vmul.f32 %v165_v50, %v153_v35  ;;  %v164_v53 = vadd.f32 -0.28449672, %v162_v51 }
 0x104   :  { %v169_v54 = vadd.f32 0.2548296, %v167_v52  ;;  %v166_v55 = vmul.f32 %v164_v53, %v152_v40 }
 0x106   :  { %v171_v56 = vmul.f32 %v169_v54, %v153_v35  ;;  %v168_v58 = vadd.f32 0.2548296, %v166_v55 }
 0x108   :  { %v181_v59 = vmul.f32 %v558_v57, %v171_v56  ;;  %v170_v60 = vmul.f32 %v168_v58, %v152_v40 }
 0x10a   :  { %v183_v62 = vsub.f32 1.0, %v181_v59  ;;  %v180_v63 = vmul.f32 %v560_v61, %v170_v60 }
 0x10c   :  { %v187_v0 = vsub.f32 0.0, %v183_v62  ;;  %v182_v1 = vsub.f32 1.0, %v180_v63 }
 0x10e   :  { %v189_v2 = vsel %vm185_vm1, %v187_v0, %v183_v62  ;;  %v186_v3 = vsub.f32 0.0, %v182_v1 }
 0x10f   :  { %v191_v4 = vadd.f32 1.0, %v189_v2 }
 0x110   :  { %v188_v5 = vsel %vm184_vm2, %v186_v3, %v182_v1 }
 0x111   :  { %v190_v7 = vadd.f32 1.0, %v188_v5  ;;  %v193_v10 = vmul.f32 %v191_v4, %v137_v8 }
 0x113   :  { %v192_v9 = vmul.f32 %v190_v7, %v136_v6 }
 0x115   :  { %527 = vmatprep.mubr.msk.f32.mxu1 %vm209_vm3, %v192_v9 }
 0x116   :  { %528 = vmatmul.mubr.msk.f32.vlgmr.msra.gmra.mxu1 %vm209_vm3, %v193_v10 }
 0x1d6   :  { %v529_v20 = vpop.f32.mrf.mxu1 }
 0x1d7   :  { %v288_v21 = vadd.f32 %v529_v20, %v468_v19 }
 0x1d8   :  { %v282_v22 = vpop.f32.mrf.mxu1 }
 0x1d9   :  { %v294_v23 = vmul.f32 0.70710677, %v288_v21  ;;  %v283_v24 = vadd.f32 %v468_v19, %v282_v22  ;;  %v292_v13 = vmul.f32 0.5, %v288_v21 }
 0x1db   :  { %v296_v25 = vand.u32 2147483647, %v294_v23  ;;  %v293_v26 = vmul.f32 0.70710677, %v283_v24  ;;  %vm340_vm4 = vcmp.lt.f32.partialorder %v294_v23, 0.0  ;;  %v291_v11 = vmul.f32 0.5, %v283_v24 }
 0x1dd   :  { %v298_v27 = vmul.f32 0.3275911, %v296_v25  ;;  %v295_v28 = vand.u32 2147483647, %v293_v26  ;;  %v328_v32 = vsub.f32 0.0, %v296_v25  ;;  %vm339_vm5 = vcmp.lt.f32.partialorder %v293_v26, 0.0 }
 0x1df   :  { %v300_v29 = vadd.f32 1.0, %v298_v27  ;;  %v297_v30 = vmul.f32 0.3275911, %v295_v28  ;;  %v327_v35 = vsub.f32 0.0, %v295_v28  ;;  %v330_v38 = vmul.f32 %v328_v32, %v296_v25 }
 0x1e1   :  { %561 = vrcp.f32 %v300_v29  ;;  %v299_v31 = vadd.f32 1.0, %v297_v30  ;;  %v329_v42 = vmul.f32 %v327_v35, %v295_v28  ;;  %v333_v44 = vmul.f32 1.442695, %v330_v38 }
 0x1e3   :  { %563 = vrcp.f32 %v299_v31  ;;  %v331_v48 = vmul.f32 1.442695, %v329_v42 }
 0x1e4   :  { %565 = vpow2.f32 %v333_v44 }
 0x1e5   :  { %567 = vpow2.f32 %v331_v48 }
 0x1ee   :  { %v562_v33 = vpop.eup %561 }
 0x1ef   :  { %v304_v34 = vmul.f32 %v562_v33, %v300_v29 }
 0x1f0   :  { %v564_v36 = vpop.eup %563 }
 0x1f1   :  { %v306_v37 = vsub.f32 2.0, %v304_v34  ;;  %v303_v39 = vmul.f32 %v564_v36, %v299_v31  ;;  %v566_v62 = vpop.eup %565 }
 0x1f2   :  { %v568_v2 = vpop.eup %567 }
 0x1f3   :  { %v308_v40 = vmul.f32 %v562_v33, %v306_v37  ;;  %v305_v41 = vsub.f32 2.0, %v303_v39 }
 0x1f5   :  { %v310_v43 = vmul.f32 1.0614054, %v308_v40  ;;  %v307_v45 = vmul.f32 %v564_v36, %v305_v41 }
 0x1f7   :  { %v312_v46 = vadd.f32 -1.4531521, %v310_v43  ;;  %v309_v47 = vmul.f32 1.0614054, %v307_v45 }
 0x1f9   :  { %v314_v49 = vmul.f32 %v312_v46, %v308_v40  ;;  %v311_v50 = vadd.f32 -1.4531521, %v309_v47 }
 0x1fb   :  { %v316_v51 = vadd.f32 1.4214138, %v314_v49  ;;  %v313_v52 = vmul.f32 %v311_v50, %v307_v45 }
 0x1fd   :  { %v318_v53 = vmul.f32 %v316_v51, %v308_v40  ;;  %v315_v54 = vadd.f32 1.4214138, %v313_v52 }
 0x1ff   :  { %v320_v55 = vadd.f32 -0.28449672, %v318_v53  ;;  %v317_v56 = vmul.f32 %v315_v54, %v307_v45 }
 0x201   :  { %v322_v57 = vmul.f32 %v320_v55, %v308_v40  ;;  %v319_v58 = vadd.f32 -0.28449672, %v317_v56 }
 0x203   :  { %v324_v59 = vadd.f32 0.2548296, %v322_v57  ;;  %v321_v60 = vmul.f32 %v319_v58, %v307_v45 }
 0x205   :  { %v326_v61 = vmul.f32 %v324_v59, %v308_v40  ;;  %v323_v63 = vadd.f32 0.2548296, %v321_v60 }
 0x207   :  { %v336_v0 = vmul.f32 %v566_v62, %v326_v61  ;;  %v325_v1 = vmul.f32 %v323_v63, %v307_v45 }
 0x209   :  { %v338_v3 = vsub.f32 1.0, %v336_v0  ;;  %v335_v4 = vmul.f32 %v568_v2, %v325_v1 }
 0x20b   :  { %v342_v5 = vsub.f32 0.0, %v338_v3  ;;  %v337_v6 = vsub.f32 1.0, %v335_v4 }
 0x20d   :  { %v344_v7 = vsel %vm340_vm4, %v342_v5, %v338_v3  ;;  %v341_v8 = vsub.f32 0.0, %v337_v6 }
 0x20e   :  { %v346_v9 = vadd.f32 1.0, %v344_v7 }
 0x20f   :  { %v343_v10 = vsel %vm339_vm5, %v341_v8, %v337_v6 }
 0x210   :  { %v345_v12 = vadd.f32 1.0, %v343_v10  ;;  %v348_v15 = vmul.f32 %v346_v9, %v292_v13 }
 0x212   :  { %v347_v14 = vmul.f32 %v345_v12, %v291_v11 }
 0x214   :  { %546 = vmatprep.mubr.msk.f32.mxu0 %vm209_vm3, %v347_v14 }
 0x215   :  { %547 = vmatmul.mubr.msk.f32.vlgmr.msra.gmra.mxu0 %vm209_vm3, %v348_v15 }
 0x2d5   :  { %v548_v17 = vpop.f32.mrf.mxu0 }
 0x2d6   :  { %v442_v18 = vadd.f32 %v548_v17, %v471_v16 }
 0x2d7   :  { %v436_v19 = vpop.f32.mrf.mxu0 }
 0x2d8   :  { %v437_v20 = vadd.f32 %v471_v16, %v436_v19  ;;  %447 = vst.msk [vmem:[#allocation5 + $0x8] sm:$0xff] %vm445_vm6, %v442_v18 }
 0x2da   :  { %446 = vst.msk [vmem:[#allocation5] sm:$0xff] %vm445_vm6, %v437_v20 }
 0x2db   :  { %600 = shalt.err (!%p597_p9)
}
 0x2dc   :  { %459 = dma.vmem_to_hbm [thread:$0]  %s454_s22, 256, %s745_s7, [#allocation4], %s614_s27, %s614_s27, %s615_s28  }
 0x2dd   :  { %611 = dma.done.wait [#allocation4], 256  }
 0x2de   :  { %612 = vsyncadd [#allocation4], 4294967040 }
 0x2df   :  { %463 = vsyncpa [#allocation3], 1 }
 0x2e0   :  { %464 = vsyncpa [#allocation4], 1 }

</bundles_post_ra>
